<compile_context>
chip_gen: v5e
topology: v5e:2x2
jax: 0.10.0
libtpu: 0.0.40
codegen_flags: <defaults>
</compile_context>

<pallas_src>
import jax
import jax.numpy as jnp
from jax.experimental import pallas as pl
from jax.experimental.pallas import tpu as pltpu


def _round_up(x, m):
    return (x + m - 1) // m * m


def tagger_kernel(ids_ref, emb_ref, w_ref, b_ref, out_ref, x_ref):
    # ids_ref: VMEM (TB, S)        int32  token ids for this batch tile
    # emb_ref: VMEM (TV, E_pad)    f32    one vocab tile of the embedding table
    # w_ref:   VMEM (E_pad, T_pad) f32    fc weight (pre-transposed, padded)
    # b_ref:   VMEM (1, T_pad)     f32    fc bias (padded)
    # out_ref: VMEM (TB, T_pad)    f32    lane-dense output tile
    # x_ref:   VMEM scratch (TB, E_pad) f32  pooled-embedding accumulator
    vi = pl.program_id(1)                      # vocab tile ("arbitrary" / reduction)
    tb, seq = ids_ref.shape
    tv = emb_ref.shape[0]

    @pl.when(vi == 0)
    def _init():
        x_ref[...] = jnp.zeros_like(x_ref)

    # Vocab ids covered by this tile, laid out along lanes.
    lane_ids = jax.lax.broadcasted_iota(jnp.int32, (1, tv), 1) + vi * tv

    # counts[b, v] = (#occurrences of vocab id v in row b) / S, built with one
    # full-tile (TB, TV) compare per sequence position (vectorized over both
    # sublanes and lanes).  S is static, so this is a static loop.
    # TODO(synk): for large S and/or very large vocabularies a scalar-prefetch
    # driven row gather of the S embedding rows would move far fewer bytes.
    hits = jnp.zeros((tb, tv), jnp.float32)
    for s in range(seq):
        tok = ids_ref[:, s:s + 1]              # (TB, 1) int32, static lane slice
        hits = hits + (tok == lane_ids).astype(jnp.float32)
    counts = hits * jnp.float32(1.0 / seq)

    # Fused gather + mean over this vocab tile on the MXU: x += counts @ emb.
    x_ref[...] += jnp.dot(counts, emb_ref[...],
                          preferred_element_type=jnp.float32)

    @pl.when(vi == pl.num_programs(1) - 1)
    def _finalize():
        logits = jnp.dot(x_ref[...], w_ref[...],
                         preferred_element_type=jnp.float32) + b_ref[...]
        out_ref[...] = jax.nn.sigmoid(logits).astype(out_ref.dtype)


def prepare_tagger_params(embedding, fc_w, fc_b, *,
                          vmem_budget_bytes=14 * 1024 * 1024, max_tb=256):
    """Pad / transpose the parameters ONCE (init time, outside the hot path)."""
    V, E = embedding.shape
    T = fc_w.shape[0]
    E_pad = _round_up(E, 128)
    T_pad = _round_up(T, 128)

    # Vocab tile: biggest tile keeping the double-buffered emb stream plus a
    # worst-case (max_tb, TV) counts tile inside a conservative VMEM budget
    # (fits the default scoped VMEM on v5e/v6e/v7x).  When the whole padded
    # table fits, use one vocab tile so it is fetched from HBM exactly once.
    esz = embedding.dtype.itemsize
    bytes_per_tv_row = 2 * E_pad * esz + max_tb * 4
    tv_cap = max(8, (vmem_budget_bytes // bytes_per_tv_row) // 8 * 8)
    V8 = _round_up(V, 8)
    TV = V8 if V8 <= tv_cap else tv_cap
    V_pad = _round_up(V, TV)

    # Padded vocab rows / fc columns are zero, so the pad is inert.
    emb_pad = jnp.zeros((V_pad, E_pad), embedding.dtype)
    emb_pad = emb_pad.at[:V, :E].set(embedding)
    w_pad = jnp.zeros((E_pad, T_pad), fc_w.dtype)
    w_pad = w_pad.at[:E, :T].set(fc_w.T)
    b_pad = jnp.zeros((1, T_pad), jnp.float32)
    b_pad = b_pad.at[0, :T].set(fc_b.astype(jnp.float32))
    # emb_pad / w_pad may also be stored as bfloat16 (f32 MXU accumulation is
    # kept via preferred_element_type) to halve the dominant HBM stream.
    return dict(emb=emb_pad, w=w_pad, b=b_pad, num_tags=T, tv=TV, max_tb=max_tb)


def simple_nlp_tagger(input_ids, params):
    """input_ids: (B, S) int -> (B, num_tags) f32."""
    B, S = input_ids.shape
    emb, w, b = params["emb"], params["w"], params["b"]
    T = params["num_tags"]
    TV = params["tv"]
    V_pad, E_pad = emb.shape
    T_pad = w.shape[1]

    # Batch tile: up to 256 MXU rows; small batches stay at the 8-sublane floor.
    TB = min(params["max_tb"], _round_up(B, 8))
    B_pad = _round_up(B, TB)

    # Pad the batch with id -1 (never matches any vocab lane -> inert rows).
    ids_pad = jnp.full((B_pad, S), -1, dtype=jnp.int32)
    ids_pad = ids_pad.at[:B, :].set(input_ids.astype(jnp.int32))

    grid = (B_pad // TB, V_pad // TV)

    out_padded = pl.pallas_call(
        tagger_kernel,
        out_shape=jax.ShapeDtypeStruct((B_pad, T_pad), jnp.float32),
        grid_spec=pltpu.PrefetchScalarGridSpec(
            num_scalar_prefetch=0,
            grid=grid,
            in_specs=[
                pl.BlockSpec((TB, S), lambda bi, vi: (bi, 0)),        # ids
                pl.BlockSpec((TV, E_pad), lambda bi, vi: (vi, 0)),    # emb tile
                pl.BlockSpec((E_pad, T_pad), lambda bi, vi: (0, 0)),  # fc weight
                pl.BlockSpec((1, T_pad), lambda bi, vi: (0, 0)),      # fc bias
            ],
            out_specs=pl.BlockSpec((TB, T_pad), lambda bi, vi: (bi, 0)),
            scratch_shapes=[
                pltpu.VMEM((TB, E_pad), jnp.float32),  # pooled-embedding acc
            ],
        ),
        compiler_params=pltpu.CompilerParams(
            dimension_semantics=("parallel", "arbitrary")),
    )(ids_pad, emb, w, b)

    return out_padded[:B, :T]


def reference(input_ids, embedding, fc_w, fc_b):
    x = jnp.take(embedding, input_ids, axis=0).mean(axis=1)
    return jax.nn.sigmoid(x @ fc_w.T + fc_b)


if __name__ == "__main__":
    # Small synthetic sizes consistent with the module's forward.
    vocab_size = 128
    embed_size = 128
    num_tags = 8
    batch, seq = 2, 8

    key = jax.random.PRNGKey(0)
    k_ids, k_emb, k_w, k_b = jax.random.split(key, 4)

    input_ids = jax.random.randint(k_ids, (batch, seq), 0, vocab_size,
                                   dtype=jnp.int32)
    embedding = jax.random.normal(k_emb, (vocab_size, embed_size),
                                  dtype=jnp.float32)
    fc_w = jax.random.normal(k_w, (num_tags, embed_size), dtype=jnp.float32) * 0.05
    fc_b = jax.random.normal(k_b, (num_tags,), dtype=jnp.float32) * 0.05

    params = prepare_tagger_params(embedding, fc_w, fc_b)
    out = simple_nlp_tagger(input_ids, params)
    out = jax.block_until_ready(out)

    ref = reference(input_ids, embedding, fc_w, fc_b)
    assert out.shape == (batch, num_tags)
    assert jnp.allclose(out, ref, atol=1e-5, rtol=1e-4), jnp.max(jnp.abs(out - ref))

    print("KERNEL_OK")
</pallas_src>

<mosaic_0001>
module attributes {stable_mosaic.version = 11 : i64} {
  func.func @tagger_kernel(%arg0: i32, %arg1: i32, %arg2: memref<8x8xi32, #tpu.memory_space<vmem>>, %arg3: memref<128x128xf32, #tpu.memory_space<vmem>>, %arg4: memref<128x128xf32, #tpu.memory_space<vmem>>, %arg5: memref<1x128xf32, #tpu.memory_space<vmem>>, %arg6: memref<8x128xf32, #tpu.memory_space<vmem>>, %arg7: memref<8x128xf32, #tpu.memory_space<vmem>>) attributes {dimension_semantics = [#tpu.dimension_semantics<parallel>, #tpu.dimension_semantics<arbitrary>], iteration_bounds = array<i64: 1, 1>, scalar_prefetch = 0 : i64, scratch_operands = 1 : i64, tpu.core_type = #tpu.core_type<tc>, window_params = [{transform_indices = @transform_0, window_bounds = array<i64: 8, 8>}, {transform_indices = @transform_1, window_bounds = array<i64: 128, 128>}, {pipeline_mode = #tpu.pipeline_mode<synchronous>, transform_indices = @transform_2, window_bounds = array<i64: 128, 128>}, {pipeline_mode = #tpu.pipeline_mode<synchronous>, transform_indices = @transform_3, window_bounds = array<i64: 1, 128>}, {transform_indices = @transform_4, window_bounds = array<i64: 8, 128>}]} {
    %c0_i32 = arith.constant 0 : i32
    %0 = arith.cmpi eq, %arg1, %c0_i32 : i32
    %1 = arith.extui %0 : i1 to i32
    %c0_i32_0 = arith.constant 0 : i32
    %2 = arith.cmpi ne, %1, %c0_i32_0 : i32
    scf.if %2 {
      %cst_19 = arith.constant 0.000000e+00 : f32
      %74 = vector.broadcast %cst_19 : f32 to vector<8x128xf32>
      %c0_20 = arith.constant 0 : index
      %c0_21 = arith.constant 0 : index
      %75 = vector.load %arg7[%c0_20, %c0_21] : memref<8x128xf32, #tpu.memory_space<vmem>>, vector<8x128xf32>
      tpu.vector_store %arg7[%c0_20, %c0_21], %74 {strides = array<i32>} : memref<8x128xf32, #tpu.memory_space<vmem>>, vector<8x128xf32>,
    } else {
    }
    %3 = tpu.iota {dimensions = array<i32: 1>} : vector<1x128xi32>
    %c128_i32 = arith.constant 128 : i32
    %4 = arith.muli %arg1, %c128_i32 : i32
    %5 = vector.broadcast %4 : i32 to vector<1x128xi32>
    %6 = arith.addi %3, %5 : vector<1x128xi32>
    %cst = arith.constant 0.000000e+00 : f32
    %7 = vector.broadcast %cst : f32 to vector<8x128xf32>
    %c0 = arith.constant 0 : index
    %c0_1 = arith.constant 0 : index
    %8 = vector.load %arg2[%c0, %c0_1] : memref<8x8xi32, #tpu.memory_space<vmem>>, vector<8x1xi32>
    %9 = vector.broadcast %8 : vector<8x1xi32> to vector<8x128xi32>
    %10 = vector.broadcast %6 : vector<1x128xi32> to vector<8x128xi32>
    %11 = arith.cmpi eq, %9, %10 : vector<8x128xi32>
    %12 = arith.extui %11 : vector<8x128xi1> to vector<8x128xi32>
    %13 = arith.sitofp %12 : vector<8x128xi32> to vector<8x128xf32>
    %14 = arith.addf %7, %13 : vector<8x128xf32>
    %c0_2 = arith.constant 0 : index
    %c1 = arith.constant 1 : index
    %15 = vector.load %arg2[%c0_2, %c1] : memref<8x8xi32, #tpu.memory_space<vmem>>, vector<8x1xi32>
    %16 = vector.broadcast %15 : vector<8x1xi32> to vector<8x128xi32>
    %17 = vector.broadcast %6 : vector<1x128xi32> to vector<8x128xi32>
    %18 = arith.cmpi eq, %16, %17 : vector<8x128xi32>
    %19 = arith.extui %18 : vector<8x128xi1> to vector<8x128xi32>
    %20 = arith.sitofp %19 : vector<8x128xi32> to vector<8x128xf32>
    %21 = arith.addf %14, %20 : vector<8x128xf32>
    %c0_3 = arith.constant 0 : index
    %c2 = arith.constant 2 : index
    %22 = vector.load %arg2[%c0_3, %c2] : memref<8x8xi32, #tpu.memory_space<vmem>>, vector<8x1xi32>
    %23 = vector.broadcast %22 : vector<8x1xi32> to vector<8x128xi32>
    %24 = vector.broadcast %6 : vector<1x128xi32> to vector<8x128xi32>
    %25 = arith.cmpi eq, %23, %24 : vector<8x128xi32>
    %26 = arith.extui %25 : vector<8x128xi1> to vector<8x128xi32>
    %27 = arith.sitofp %26 : vector<8x128xi32> to vector<8x128xf32>
    %28 = arith.addf %21, %27 : vector<8x128xf32>
    %c0_4 = arith.constant 0 : index
    %c3 = arith.constant 3 : index
    %29 = vector.load %arg2[%c0_4, %c3] : memref<8x8xi32, #tpu.memory_space<vmem>>, vector<8x1xi32>
    %30 = vector.broadcast %29 : vector<8x1xi32> to vector<8x128xi32>
    %31 = vector.broadcast %6 : vector<1x128xi32> to vector<8x128xi32>
    %32 = arith.cmpi eq, %30, %31 : vector<8x128xi32>
    %33 = arith.extui %32 : vector<8x128xi1> to vector<8x128xi32>
    %34 = arith.sitofp %33 : vector<8x128xi32> to vector<8x128xf32>
    %35 = arith.addf %28, %34 : vector<8x128xf32>
    %c0_5 = arith.constant 0 : index
    %c4 = arith.constant 4 : index
    %36 = vector.load %arg2[%c0_5, %c4] : memref<8x8xi32, #tpu.memory_space<vmem>>, vector<8x1xi32>
    %37 = vector.broadcast %36 : vector<8x1xi32> to vector<8x128xi32>
    %38 = vector.broadcast %6 : vector<1x128xi32> to vector<8x128xi32>
    %39 = arith.cmpi eq, %37, %38 : vector<8x128xi32>
    %40 = arith.extui %39 : vector<8x128xi1> to vector<8x128xi32>
    %41 = arith.sitofp %40 : vector<8x128xi32> to vector<8x128xf32>
    %42 = arith.addf %35, %41 : vector<8x128xf32>
    %c0_6 = arith.constant 0 : index
    %c5 = arith.constant 5 : index
    %43 = vector.load %arg2[%c0_6, %c5] : memref<8x8xi32, #tpu.memory_space<vmem>>, vector<8x1xi32>
    %44 = vector.broadcast %43 : vector<8x1xi32> to vector<8x128xi32>
    %45 = vector.broadcast %6 : vector<1x128xi32> to vector<8x128xi32>
    %46 = arith.cmpi eq, %44, %45 : vector<8x128xi32>
    %47 = arith.extui %46 : vector<8x128xi1> to vector<8x128xi32>
    %48 = arith.sitofp %47 : vector<8x128xi32> to vector<8x128xf32>
    %49 = arith.addf %42, %48 : vector<8x128xf32>
    %c0_7 = arith.constant 0 : index
    %c6 = arith.constant 6 : index
    %50 = vector.load %arg2[%c0_7, %c6] : memref<8x8xi32, #tpu.memory_space<vmem>>, vector<8x1xi32>
    %51 = vector.broadcast %50 : vector<8x1xi32> to vector<8x128xi32>
    %52 = vector.broadcast %6 : vector<1x128xi32> to vector<8x128xi32>
    %53 = arith.cmpi eq, %51, %52 : vector<8x128xi32>
    %54 = arith.extui %53 : vector<8x128xi1> to vector<8x128xi32>
    %55 = arith.sitofp %54 : vector<8x128xi32> to vector<8x128xf32>
    %56 = arith.addf %49, %55 : vector<8x128xf32>
    %c0_8 = arith.constant 0 : index
    %c7 = arith.constant 7 : index
    %57 = vector.load %arg2[%c0_8, %c7] : memref<8x8xi32, #tpu.memory_space<vmem>>, vector<8x1xi32>
    %58 = vector.broadcast %57 : vector<8x1xi32> to vector<8x128xi32>
    %59 = vector.broadcast %6 : vector<1x128xi32> to vector<8x128xi32>
    %60 = arith.cmpi eq, %58, %59 : vector<8x128xi32>
    %61 = arith.extui %60 : vector<8x128xi1> to vector<8x128xi32>
    %62 = arith.sitofp %61 : vector<8x128xi32> to vector<8x128xf32>
    %63 = arith.addf %56, %62 : vector<8x128xf32>
    %cst_9 = arith.constant 1.250000e-01 : f32
    %64 = vector.broadcast %cst_9 : f32 to vector<8x128xf32>
    %65 = arith.mulf %63, %64 : vector<8x128xf32>
    %c0_10 = arith.constant 0 : index
    %c0_11 = arith.constant 0 : index
    %66 = vector.load %arg7[%c0_10, %c0_11] : memref<8x128xf32, #tpu.memory_space<vmem>>, vector<8x128xf32>
    %c0_12 = arith.constant 0 : index
    %c0_13 = arith.constant 0 : index
    %67 = vector.load %arg3[%c0_12, %c0_13] : memref<128x128xf32, #tpu.memory_space<vmem>>, vector<128x128xf32>
    %cst_14 = arith.constant dense<0.000000e+00> : vector<8x128xf32>
    %68 = tpu.matmul %65, %67, %cst_14 {dimension_numbers = #tpu.dot_dimension_numbers<[1], [0], [0], [1], [0, 0, 1, 1], [], []>} : vector<8x128xf32>, vector<128x128xf32>, vector<8x128xf32> -> vector<8x128xf32>
    %69 = arith.addf %66, %68 : vector<8x128xf32>
    %c0_15 = arith.constant 0 : index
    %c0_16 = arith.constant 0 : index
    %70 = vector.load %arg7[%c0_15, %c0_16] : memref<8x128xf32, #tpu.memory_space<vmem>>, vector<8x128xf32>
    tpu.vector_store %arg7[%c0_15, %c0_16], %69 {strides = array<i32>} : memref<8x128xf32, #tpu.memory_space<vmem>>, vector<8x128xf32>,
    %c0_i32_17 = arith.constant 0 : i32
    %71 = arith.cmpi eq, %arg1, %c0_i32_17 : i32
    %72 = arith.extui %71 : i1 to i32
    %c0_i32_18 = arith.constant 0 : i32
    %73 = arith.cmpi ne, %72, %c0_i32_18 : i32
    scf.if %73 {
      %c0_19 = arith.constant 0 : index
      %c0_20 = arith.constant 0 : index
      %74 = vector.load %arg7[%c0_19, %c0_20] : memref<8x128xf32, #tpu.memory_space<vmem>>, vector<8x128xf32>
      %c0_21 = arith.constant 0 : index
      %c0_22 = arith.constant 0 : index
      %75 = vector.load %arg4[%c0_21, %c0_22] : memref<128x128xf32, #tpu.memory_space<vmem>>, vector<128x128xf32>
      %cst_23 = arith.constant dense<0.000000e+00> : vector<8x128xf32>
      %76 = tpu.matmul %74, %75, %cst_23 {dimension_numbers = #tpu.dot_dimension_numbers<[1], [0], [0], [1], [0, 0, 1, 1], [], []>} : vector<8x128xf32>, vector<128x128xf32>, vector<8x128xf32> -> vector<8x128xf32>
      %c0_24 = arith.constant 0 : index
      %c0_25 = arith.constant 0 : index
      %77 = vector.load %arg5[%c0_24, %c0_25] : memref<1x128xf32, #tpu.memory_space<vmem>>, vector<1x128xf32>
      %78 = vector.broadcast %77 : vector<1x128xf32> to vector<8x128xf32>
      %79 = arith.addf %76, %78 : vector<8x128xf32>
      %80 = arith.negf %79 : vector<8x128xf32>
      %81 = math.exp %80 : vector<8x128xf32>
      %cst_26 = arith.constant 1.000000e+00 : f32
      %82 = vector.broadcast %cst_26 : f32 to vector<8x128xf32>
      %83 = arith.addf %82, %81 : vector<8x128xf32>
      %84 = arith.divf %82, %83 : vector<8x128xf32>
      %c0_27 = arith.constant 0 : index
      %c0_28 = arith.constant 0 : index
      %85 = vector.load %arg6[%c0_27, %c0_28] : memref<8x128xf32, #tpu.memory_space<vmem>>, vector<8x128xf32>
      tpu.vector_store %arg6[%c0_27, %c0_28], %84 {strides = array<i32>} : memref<8x128xf32, #tpu.memory_space<vmem>>, vector<8x128xf32>,
    } else {
    }
    return
  }
  func.func @transform_0(%arg0: i32, %arg1: i32) -> (i32, i32) {
    %c0_i32 = arith.constant 0 : i32
    %c0_i32_0 = arith.constant 0 : i32
    return %arg0, %c0_i32 : i32, i32
  }
  func.func @transform_1(%arg0: i32, %arg1: i32) -> (i32, i32) {
    %c0_i32 = arith.constant 0 : i32
    %c0_i32_0 = arith.constant 0 : i32
    return %arg1, %c0_i32 : i32, i32
  }
  func.func @transform_2(%arg0: i32, %arg1: i32) -> (i32, i32) {
    %c0_i32 = arith.constant 0 : i32
    %c0_i32_0 = arith.constant 0 : i32
    %c0_i32_1 = arith.constant 0 : i32
    return %c0_i32, %c0_i32_0 : i32, i32
  }
  func.func @transform_3(%arg0: i32, %arg1: i32) -> (i32, i32) {
    %c0_i32 = arith.constant 0 : i32
    %c0_i32_0 = arith.constant 0 : i32
    %c0_i32_1 = arith.constant 0 : i32
    return %c0_i32, %c0_i32_0 : i32, i32
  }
  func.func @transform_4(%arg0: i32, %arg1: i32) -> (i32, i32) {
    %c0_i32 = arith.constant 0 : i32
    %c0_i32_0 = arith.constant 0 : i32
    return %arg0, %c0_i32 : i32, i32
  }
}

</mosaic_0001>

<bundles_post_ra>
// kernel: tpu_custom_call.1
= control target key start
LH: loop header
LB: loop body
LE: loop exit
PB: predicated region body
PF: predicated region fallthrough
CT: control target
= control target key end

     0   :  { %9 = vsyncpa [#allocation4], 0  ;;  %s447_s0 = inlined_call_operand.hbm [shape: s32[8,8], index: 0, kind: input, shape index: {}]   ;;  %s448_s1 = inlined_call_operand.hbm [shape: f32[128,128], index: 1, kind: input, shape index: {}]   ;;  %s449_s2 = inlined_call_operand.hbm [shape: f32[128,128], index: 2, kind: input, shape index: {}]   ;;  %s450_s3 = inlined_call_operand.vmem [shape: f32[1,128], index: 3, kind: input, shape index: {}]   ;;  %s451_s4 = inlined_call_operand.hbm [shape: f32[8,128], index: 4, kind: output, shape index: {}]  }
   0x1   :  { %10 = vsyncpa [#allocation7], 0  ;;  %s27_s17 = sshll.u32 %s448_s1, 4  ;;  %s28_s17 = int_to_ptr.hbm [resolvable:$true] %s27_s17 }
   0x2   :  { %11 = vsyncpa [#allocation5], 0  ;;  %s392_s18 = smov [#allocation6]   ;;  %s17_s22 = sshll.u32 %s447_s0, 4  ;;  %s18_s22 = int_to_ptr.hbm [resolvable:$true] %s17_s22 }
   0x3   :  { %s29_s19 = sshll.u32 %s392_s18, 4  ;;  %s393_s23 = smov 128   ;;  %s30_s19 = int_to_ptr.vmem [resolvable:$true] %s29_s19 }
   0x4   :  { %s394_s24 = smov 8   ;;  %s395_s25 = smov [#allocation3]  }
   0x5   :  { %35 = dma.hbm_to_vmem [thread:$0]  %s28_s17, 2048, %s30_s19, [#allocation7], %s393_s23, %s393_s23, %s394_s24  }
   0x6   :  { %s19_s26 = sshll.u32 %s395_s25, 4  ;;  %s40_s29 = sshll.u32 %s449_s2, 4  ;;  %s20_s26 = int_to_ptr.vmem [resolvable:$true] %s19_s26  ;;  %s41_s29 = int_to_ptr.hbm [resolvable:$true] %s40_s29 }
   0x7   :  { %22 = dma.hbm_to_vmem [thread:$0]  %s18_s22, 128, %s20_s26, [#allocation4]  }
   0x8   :  { %s396_s1 = smov [#allocation8]  }
   0x9   :  { %s42_s30 = sshll.u32 %s396_s1, 4  ;;  %s43_s30 = int_to_ptr.vmem [resolvable:$true] %s42_s30 }
   0xa   :  { %48 = dma.hbm_to_vmem [thread:$0]  %s41_s29, 2048, %s43_s30, [#allocation7], %s393_s23, %s393_s23, %s394_s24  }
   0xb   :  { %386 = dma.done.wait [#allocation4], 128  }
   0xc   :  { %387 = vsyncadd [#allocation4], 4294967168 }
   0xd   :  { %388 = dma.done.wait [#allocation7], 4096  }
   0xe   :  { %389 = vsyncadd [#allocation7], 4294963200  ;;  %v397_v0 = vmov 0   ;;  %v398_v1 = vmov 2   ;;  %v399_v2 = vmov 4   ;;  %v73_v3 = vld [vmem:[#allocation3] sm:$0xff]  ;;  %v68_v29 = vlaneseq }
   0xf   :  { %276 = vset.pattern.permute.xlu0 %v397_v0  ;;  %278 = vset.pattern.permute.xlu1 %v398_v1  ;;  %v147_v4 = vld [vmem:[#allocation6 + $0x78] sm:$0xff]  ;;  %v146_v5 = vld [vmem:[#allocation6 + $0x70] sm:$0xff]  ;;  %v400_v6 = vmov 1   ;;  %v401_v7 = vmov 3   ;;  %v402_v8 = vmov 5   ;;  %v403_v9 = vmov 6  }
  0x10   :  { %280 = vset.pattern.permute.xlu2 %v399_v2  ;;  %75 = vperm.xlu0 %276, %v73_v3   ;;  %v404_v10 = vmov 7   ;;  %v145_v11 = vld [vmem:[#allocation6 + $0x68] sm:$0xff]  ;;  %v144_v12 = vld [vmem:[#allocation6 + $0x60] sm:$0xff]  ;;  %v143_v13 = vld [vmem:[#allocation6 + $0x58] sm:$0xff]  ;;  %v69_v34 = vand.u32 127, %v68_v29  ;;  %v405_v42 = vmov 0.0  }
  0x11   :  { %89 = vperm.xlu1 %278, %v73_v3   ;;  %103 = vperm.xlu2 %280, %v73_v3   ;;  %v142_v14 = vld [vmem:[#allocation6 + $0x50] sm:$0xff]  ;;  %v141_v15 = vld [vmem:[#allocation6 + $0x48] sm:$0xff]  ;;  %v140_v16 = vld [vmem:[#allocation6 + $0x40] sm:$0xff]  ;;  %s406_s5 = smov [#allocation9]  }
  0x12   :  { %148 = vmatpush.msra.mxu0 %v147_v4  ;;  %v139_v17 = vld [vmem:[#allocation6 + $0x38] sm:$0xff]  ;;  %v138_v18 = vld [vmem:[#allocation6 + $0x30] sm:$0xff]  ;;  %v137_v19 = vld [vmem:[#allocation6 + $0x28] sm:$0xff]  ;;  %s239_s6 = sshll.u32 %s406_s5, 4  ;;  %s240_s6 = int_to_ptr.vmem [resolvable:$true] %s239_s6 }
  0x13   :  { %v136_v20 = vld [vmem:[#allocation6 + $0x20] sm:$0xff]  ;;  %v135_v21 = vld [vmem:[#allocation6 + $0x18] sm:$0xff]  ;;  %v134_v22 = vld [vmem:[#allocation6 + $0x10] sm:$0xff] }
  0x14   :  { %149 = vmatpush.msra.mxu0 %v146_v5  ;;  %v133_v23 = vld [vmem:[#allocation6 + $0x8] sm:$0xff]  ;;  %v132_v24 = vld [vmem:[#allocation6] sm:$0xff]  ;;  %v189_v26 = vld [vmem:[#allocation8 + $0x78] sm:$0xff] }
  0x15   :  { %v188_v27 = vld [vmem:[#allocation8 + $0x70] sm:$0xff]  ;;  %194 = vmatpush.msra.mxu1 %v189_v26  ;;  %v187_v28 = vld [vmem:[#allocation8 + $0x68] sm:$0xff]  ;;  %v186_v32 = vld [vmem:[#allocation8 + $0x60] sm:$0xff] }
  0x16   :  { %150 = vmatpush.msra.mxu0 %v145_v11  ;;  %v185_v33 = vld [vmem:[#allocation8 + $0x58] sm:$0xff]  ;;  %v184_v35 = vld [vmem:[#allocation8 + $0x50] sm:$0xff]  ;;  %v183_v37 = vld [vmem:[#allocation8 + $0x48] sm:$0xff] }
  0x17   :  { %195 = vmatpush.msra.mxu1 %v188_v27  ;;  %v182_v38 = vld [vmem:[#allocation8 + $0x40] sm:$0xff]  ;;  %v181_v41 = vld [vmem:[#allocation8 + $0x38] sm:$0xff]  ;;  %v180_v46 = vld [vmem:[#allocation8 + $0x30] sm:$0xff] }
  0x18   :  { %277 = vset.pattern.permute.xlu0 %v400_v6  ;;  %151 = vmatpush.msra.mxu0 %v144_v12  ;;  %v179_v49 = vld [vmem:[#allocation8 + $0x28] sm:$0xff]  ;;  %v178_v53 = vld [vmem:[#allocation8 + $0x20] sm:$0xff]  ;;  %v177_v57 = vld [vmem:[#allocation8 + $0x18] sm:$0xff] }
  0x19   :  { %279 = vset.pattern.permute.xlu1 %v401_v7  ;;  %82 = vperm.xlu0 %277, %v73_v3   ;;  %v176_v61 = vld [vmem:[#allocation8 + $0x10] sm:$0xff]  ;;  %v175_v0 = vld [vmem:[#allocation8 + $0x8] sm:$0xff]  ;;  %v285_v5 = vld [vmem:[%s450_s3] ss:$0 sm:$0xff]  ;;  %s241_s3 = sshll.u32 %s451_s4, 4  ;;  %s242_s3 = int_to_ptr.hbm [resolvable:$true] %s241_s3 }
  0x1a   :  { %96 = vperm.xlu1 %279, %v73_v3   ;;  %281 = vset.pattern.permute.xlu2 %v402_v8 }
  0x1b   :  { %110 = vperm.xlu2 %281, %v73_v3   ;;  %152 = vmatpush.msra.mxu0 %v143_v13 }
  0x1c   :  { %196 = vmatpush.msra.mxu1 %v187_v28 }
  0x1d   :  { %153 = vmatpush.msra.mxu0 %v142_v14 }
  0x1e   :  { %197 = vmatpush.msra.mxu1 %v186_v32 }
  0x1f   :  { %154 = vmatpush.msra.mxu0 %v141_v15 }
  0x20   :  { %198 = vmatpush.msra.mxu1 %v185_v33 }
  0x21   :  { %284 = vset.pattern.permute.xlu0 %v404_v10  ;;  %155 = vmatpush.msra.mxu0 %v140_v16 }
  0x22   :  { %282 = vset.pattern.permute.xlu1 %v403_v9  ;;  %199 = vmatpush.msra.mxu1 %v184_v35 }
  0x23   :  { %117 = vperm.xlu1 %282, %v73_v3   ;;  %283 = vset.pattern.permute.xlu2 %v404_v10 }
  0x24   :  { %124 = vperm.xlu2 %283, %v73_v3   ;;  %156 = vmatpush.msra.mxu0 %v139_v17  ;;  %v174_v3 = vld [vmem:[#allocation8] sm:$0xff] }
  0x25   :  { %200 = vmatpush.msra.mxu1 %v183_v37 }
  0x26   :  { %157 = vmatpush.msra.mxu0 %v138_v18 }
  0x27   :  { %201 = vmatpush.msra.mxu1 %v182_v38 }
  0x28   :  { %158 = vmatpush.msra.mxu0 %v137_v19 }
  0x29   :  { %202 = vmatpush.msra.mxu1 %v181_v41 }
  0x2a   :  { %159 = vmatpush.msra.mxu0 %v136_v20 }
  0x2b   :  { %203 = vmatpush.msra.mxu1 %v180_v46 }
  0x2c   :  { %160 = vmatpush.msra.mxu0 %v135_v21 }
  0x2d   :  { %204 = vmatpush.msra.mxu1 %v179_v49 }
  0x2e   :  { %161 = vmatpush.msra.mxu0 %v134_v22 }
  0x2f   :  { %205 = vmatpush.msra.mxu1 %v178_v53 }
  0x30   :  { %162 = vmatpush.msra.mxu0 %v133_v23 }
  0x31   :  { %206 = vmatpush.msra.mxu1 %v177_v57 }
  0x32   :  { %163 = vmatpush.msra.mxu0 %v132_v24 }
  0x33   :  { %207 = vmatpush.msra.mxu1 %v176_v61 }
  0x35   :  { %208 = vmatpush.msra.mxu1 %v175_v0 }
  0x37   :  { %209 = vmatpush.msra.mxu1 %v174_v3 }
  0x6b   :  { %v104_v25 = vpop.permute.xlu2 %103 }
  0x6c   :  { %vm105_vm4 = vcmp.eq.s32.totalorder %v104_v25, %v69_v34 }
  0x6d   :  { %v256_v54 = vsel %vm105_vm4, 1.0, %v405_v42 }
  0x75   :  { %v111_v36 = vpop.permute.xlu2 %110 }
  0x76   :  { %vm112_vm5 = vcmp.eq.s32.totalorder %v111_v36, %v69_v34 }
  0x77   :  { %v257_v58 = vsel %vm112_vm5, 1.0, %v405_v42 }
  0x7e   :  { %v125_v51 = vpop.permute.xlu2 %124 }
  0x7f   :  { %vm126_vm6 = vcmp.eq.s32.totalorder %v125_v51, %v69_v34 }
  0x80   :  { %v259_v62 = vsel %vm126_vm6, 1.0, %v405_v42 }
  0x82   :  { %v76_v30 = vpop.permute.xlu0 %75 }
  0x83   :  { %v90_v31 = vpop.permute.xlu1 %89  ;;  %vm77_vm0 = vcmp.eq.s32.totalorder %v76_v30, %v69_v34 }
  0x84   :  { %vm91_vm1 = vcmp.eq.s32.totalorder %v90_v31, %v69_v34  ;;  %v252_v43 = vsel %vm77_vm0, 1.0, %v405_v42 }
  0x85   :  { %v254_v47 = vsel %vm91_vm1, 1.0, %v405_v42 }
  0x8b   :  { %v83_v39 = vpop.permute.xlu0 %82 }
  0x8c   :  { %v97_v40 = vpop.permute.xlu1 %96  ;;  %vm84_vm2 = vcmp.eq.s32.totalorder %v83_v39, %v69_v34 }
  0x8d   :  { %v253_v44 = vsel %vm84_vm2, 1.0, %v405_v42  ;;  %vm98_vm3 = vcmp.eq.s32.totalorder %v97_v40, %v69_v34 }
  0x8e   :  { %v87_v45 = vadd.f32 %v253_v44, %v252_v43  ;;  %v255_v50 = vsel %vm98_vm3, 1.0, %v405_v42 }
  0x90   :  { %v94_v48 = vadd.f32 %v254_v47, %v87_v45 }
  0x92   :  { %v101_v52 = vadd.f32 %v255_v50, %v94_v48 }
  0x94   :  { %v108_v55 = vadd.f32 %v256_v54, %v101_v52 }
  0x95   :  { %v118_v56 = vpop.permute.xlu1 %117 }
  0x96   :  { %vm119_vm7 = vcmp.eq.s32.totalorder %v118_v56, %v69_v34  ;;  %v115_v59 = vadd.f32 %v257_v58, %v108_v55 }
  0x97   :  { %v258_v60 = vsel %vm119_vm7, 1.0, %v405_v42 }
  0x98   :  { %v122_v63 = vadd.f32 %v258_v60, %v115_v59 }
  0x9a   :  { %v129_v1 = vadd.f32 %v259_v62, %v122_v63 }
  0x9c   :  { %v130_v2 = vmul.f32 0.125, %v129_v1 }
  0x9e   :  { %164 = vmatmul.f32.vlgmr.msra.gmra.mxu0 %v130_v2 }
 0x11b   :  { %v165_v4 = vpop.f32.mrf.mxu0 }
 0x11c   :  { %210 = vmatmul.f32.vlgmr.msra.gmra.mxu1 %v165_v4 }
 0x199   :  { %v211_v6 = vpop.f32.mrf.mxu1 }
 0x19a   :  { %v212_v7 = vadd.f32 %v285_v5, %v211_v6 }
 0x19c   :  { %v260_v8 = vmul.f32 -1.442695, %v212_v7 }
 0x19e   :  { %286 = vpow2.f32 %v260_v8 }
 0x1a4   :  { %v287_v9 = vpop.eup %286 }
 0x1a5   :  { %v217_v10 = vadd.f32 1.0, %v287_v9 }
 0x1a7   :  { %288 = vrcp.f32 %v217_v10  ;;  %v229_v14 = vand.u32 2147483648, %v217_v10  ;;  %v227_v16 = vand.u32 2147483647, %v217_v10  ;;  %vm223_vm9 = vweird.f32 %v217_v10 }
 0x1a9   :  { %v230_v18 = vor.u32 1.1754944e-38, %v229_v14  ;;  %vm228_vm11 = vcmp.eq.f32.partialorder %v227_v16, 8.507059e+37 }
 0x1ad   :  { %v289_v11 = vpop.eup %288 }
 0x1ae   :  { %v219_v12 = vmul.f32 %v289_v11, %v217_v10  ;;  %vm224_vm8 = vweird.f32 %v289_v11 }
 0x1af   :  { %vm225_vm10 = vmor %vm223_vm9, %vm224_vm8 }
 0x1b0   :  { %v220_v13 = vsub.f32 1.0, %v219_v12 }
 0x1b2   :  { %v221_v15 = vmul.f32 %v289_v11, %v220_v13 }
 0x1b4   :  { %v222_v17 = vadd.f32 %v289_v11, %v221_v15 }
 0x1b6   :  { %v226_v19 = vsel %vm225_vm10, %v289_v11, %v222_v17 }
 0x1b7   :  { %v231_v20 = vsel %vm228_vm11, %v230_v18, %v226_v19 }
 0x1b8   :  { %233 = vst [vmem:[#allocation9] sm:$0xff] %v231_v20 }
 0x1b9   :  { %244 = dma.vmem_to_hbm [thread:$0]  %s240_s6, 128, %s242_s3, [#allocation5]  }
 0x1ba   :  { %390 = dma.done.wait [#allocation5], 128  }
 0x1bb   :  { %391 = vsyncadd [#allocation5], 4294967168 }
 0x1bc   :  { %249 = vsyncpa [#allocation4], 1 }
 0x1bd   :  { %250 = vsyncpa [#allocation7], 1 }
 0x1be   :  { %251 = vsyncpa [#allocation5], 1 }

</bundles_post_ra>
